<compile_context>
chip_gen: v6e
topology: v6e:2x2x1
jax: 0.10.0
libtpu: 0.0.40
codegen_flags: <defaults>
</compile_context>

<pallas_src>
import functools
import numpy as np
import jax
import jax.numpy as jnp
from jax.experimental import pallas as pl
from jax.experimental.pallas import tpu as pltpu


# ----------------------------------------------------------------------------
# Parameter / buffer construction (matches PositionalAgentEncoding.build_pos_enc)
# ----------------------------------------------------------------------------
def build_pos_enc(max_len, d_model):
    position = np.arange(max_len, dtype=np.float32)[:, None]
    div_term = np.exp(
        np.arange(0, d_model, 2, dtype=np.float32) * (-np.log(10000.0) / d_model)
    )
    pe = np.zeros((max_len, d_model), dtype=np.float32)
    pe[:, 0::2] = np.sin(position * div_term)
    pe[:, 1::2] = np.cos(position * div_term)
    return jnp.asarray(pe[:, None, :])  # (max_len, 1, d_model), same as torch buffer


# ----------------------------------------------------------------------------
# Pallas kernel:  out_tile = x_tile @ Wx^T + row_bias_tile
#   x_ref    : (TILE_S, D_in)   activations (bf16 on v6e/v7x, f32 optional)
#   w_ref    : (D_out, D_in)    x-column block of fc.weight (torch layout);
#                               constant index_map -> stays VMEM-resident,
#                               dot_general contracts on dim 1 so no transpose
#   bias_ref : (TILE_S, D_out)  precomputed f32 row bias (pos/agent enc folded)
#   o_ref    : (TILE_S, D_out)
# ----------------------------------------------------------------------------
def _pae_fc_kernel(x_ref, w_ref, bias_ref, o_ref):
    acc = jax.lax.dot_general(
        x_ref[...], w_ref[...],
        dimension_numbers=(((1,), (1,)), ((), ())),   # contract D_in with D_in
        preferred_element_type=jnp.float32)
    o_ref[...] = (acc + bias_ref[...]).astype(o_ref.dtype)


# ----------------------------------------------------------------------------
# Wrapper: concat=True, use_agent_enc=True forward; dropout is eval-mode identity.
# ----------------------------------------------------------------------------
def positional_agent_encoding_fwd(x, pe, ae, fc_w, fc_b, *, num_a,
                                  t_offset=0, a_offset=0,
                                  tile_s=512, compute_dtype=jnp.bfloat16):
    S, B, D = x.shape
    num_t = S // num_a

    # --- split fc.weight (D, 3D) into its x / pos / agent column blocks -----
    w_x = fc_w[:, 0:D]
    w_p = fc_w[:, D:2 * D]
    w_a = fc_w[:, 2 * D:3 * D]

    # --- fold pos/agent encodings + bias into a compact (S, D) f32 row bias --
    # (tiny (num_t,D)/(num_a,D) matmuls; no (S,B,D) broadcast slabs in HBM)
    pe_sl = pe[t_offset:num_t + t_offset, 0, :].astype(jnp.float32)   # (num_t, D)
    ae_sl = ae[a_offset:num_a + a_offset, 0, :].astype(jnp.float32)   # (num_a, D)
    bias_t = pe_sl @ w_p.astype(jnp.float32).T                        # (num_t, D)
    bias_a = ae_sl @ w_a.astype(jnp.float32).T                        # (num_a, D)
    # row s = t*num_a + a  (pe repeat_interleave over agents, ae tiled over time)
    row_bias = (bias_t[:, None, :] + bias_a[None, :, :]).reshape(S, D)
    row_bias = (row_bias + fc_b.astype(jnp.float32)).astype(jnp.float32)

    # --- layout (B, S, D): block last-two dims = (rows, d_model); free at B=1 -
    xb = jnp.transpose(x, (1, 0, 2)).astype(compute_dtype)
    w_x = w_x.astype(compute_dtype)

    ts = S if S <= tile_s else max(8, (tile_s // 8) * 8)
    grid = (B, pl.cdiv(S, ts))
    # VMEM per step (double-buffered): 2*(x + bias + out) tiles + W; with the
    # default ts=512 and D<=512 this is a few MiB -- far under the 32 MiB cap,
    # which itself is half of v7x's 64 MiB physical VMEM.

    out = pl.pallas_call(
        _pae_fc_kernel,
        out_shape=jax.ShapeDtypeStruct((B, S, D), x.dtype),
        grid_spec=pltpu.PrefetchScalarGridSpec(
            num_scalar_prefetch=0,
            grid=grid,
            in_specs=[
                pl.BlockSpec((None, ts, D), lambda b, i: (b, i, 0)),  # x tile
                pl.BlockSpec((D, D), lambda b, i: (0, 0)),            # Wx (resident)
                pl.BlockSpec((ts, D), lambda b, i: (i, 0)),           # row-bias tile
            ],
            out_specs=pl.BlockSpec((None, ts, D), lambda b, i: (b, i, 0)),
        ),
        compiler_params=pltpu.CompilerParams(
            dimension_semantics=("parallel", "parallel"),
            vmem_limit_bytes=32 * 1024 * 1024,
        ),
    )(xb, w_x, row_bias)

    # TODO(synk): nn.Dropout(p=0.1) is identity in eval mode; training-mode dropout
    # would use pltpu.prng_seed / pltpu.prng_random_bits inside the kernel.
    return jnp.transpose(out, (1, 0, 2))


# ----------------------------------------------------------------------------
# Pure-JAX f32 reference (mirrors the PyTorch forward) for correctness checks
# ----------------------------------------------------------------------------
def reference_fwd(x, pe, ae, fc_w, fc_b, *, num_a, t_offset=0, a_offset=0):
    S, B, D = x.shape
    num_t = S // num_a
    pos = jnp.repeat(pe[t_offset:num_t + t_offset], num_a, axis=0)    # (S,1,D)
    agt = jnp.tile(ae[a_offset:num_a + a_offset], (num_t, 1, 1))      # (S,1,D)
    pos = jnp.broadcast_to(pos, (S, B, D))
    agt = jnp.broadcast_to(agt, (S, B, D))
    feat = jnp.concatenate([x, pos, agt], axis=-1)                    # (S,B,3D)
    return feat @ fc_w.T + fc_b


if __name__ == "__main__":
    def make_params(key, d_model, max_t_len=200, max_a_len=200):
        pe = build_pos_enc(max_t_len, d_model)      # self.pe buffer
        ae = build_pos_enc(max_a_len, d_model)      # self.ae buffer (not learned)
        k_w, k_b = jax.random.split(key)
        fan_in = 3 * d_model
        bound = 1.0 / np.sqrt(fan_in)
        fc_w = jax.random.uniform(k_w, (d_model, 3 * d_model),
                                  minval=-bound, maxval=bound, dtype=jnp.float32)
        fc_b = jax.random.uniform(k_b, (d_model,),
                                  minval=-bound, maxval=bound, dtype=jnp.float32)
        return pe, ae, fc_w, fc_b

    fwd = jax.jit(positional_agent_encoding_fwd,
                  static_argnames=("num_a", "t_offset", "a_offset",
                                   "tile_s", "compute_dtype"))

    key = jax.random.PRNGKey(0)
    k1, k2, k3 = jax.random.split(key, 3)

    # --- case 1: ContextEncoder-style shapes (batch=1, lane-dense d_model),
    #             bf16 activations/weight with f32 accumulation -------------
    d_model, num_a, num_t, batch = 128, 16, 64, 1
    S = num_t * num_a                                    # 1024 rows -> 2 row tiles
    pe, ae, fc_w, fc_b = make_params(k1, d_model)
    x = jax.random.normal(k2, (S, batch, d_model), dtype=jnp.float32)

    out_bf16 = jax.block_until_ready(
        fwd(x, pe, ae, fc_w, fc_b, num_a=num_a, tile_s=512,
            compute_dtype=jnp.bfloat16))
    ref = reference_fwd(x, pe, ae, fc_w, fc_b, num_a=num_a)
    np.testing.assert_allclose(np.asarray(out_bf16), np.asarray(ref),
                               rtol=2e-2, atol=2e-2)

    # --- case 2: tiny config (batch=2, d_model=32), f32 compute path --------
    d_model, num_a, num_t, batch = 32, 4, 2, 2
    S = num_t * num_a
    pe, ae, fc_w, fc_b = make_params(k3, d_model)
    x = jax.random.normal(jax.random.fold_in(k3, 7),
                          (S, batch, d_model), dtype=jnp.float32)

    out_f32 = jax.block_until_ready(
        fwd(x, pe, ae, fc_w, fc_b, num_a=num_a, compute_dtype=jnp.float32))
    ref2 = reference_fwd(x, pe, ae, fc_w, fc_b, num_a=num_a)
    np.testing.assert_allclose(np.asarray(out_f32), np.asarray(ref2),
                               rtol=5e-3, atol=5e-3)

    print("KERNEL_OK")
</pallas_src>

<mosaic_0001>
module attributes {stable_mosaic.version = 11 : i64} {
  func.func @_pae_fc_kernel(%arg0: i32, %arg1: i32, %arg2: memref<1x512x128xbf16, #tpu.memory_space<vmem>>, %arg3: memref<128x128xbf16, #tpu.memory_space<vmem>>, %arg4: memref<512x128xf32, #tpu.memory_space<vmem>>, %arg5: memref<1x512x128xf32, #tpu.memory_space<vmem>>) attributes {dimension_semantics = [#tpu.dimension_semantics<parallel>, #tpu.dimension_semantics<parallel>], iteration_bounds = array<i64: 1, 2>, scalar_prefetch = 0 : i64, scratch_operands = 0 : i64, tpu.core_type = #tpu.core_type<tc>, window_params = [{transform_indices = @transform_0, window_bounds = array<i64: 1, 512, 128>}, {pipeline_mode = #tpu.pipeline_mode<synchronous>, transform_indices = @transform_1, window_bounds = array<i64: 128, 128>}, {transform_indices = @transform_2, window_bounds = array<i64: 512, 128>}, {transform_indices = @transform_3, window_bounds = array<i64: 1, 512, 128>}]} {
    %c0 = arith.constant 0 : index
    %c0_0 = arith.constant 0 : index
    %c0_1 = arith.constant 0 : index
    %0 = vector.load %arg2[%c0, %c0_0, %c0_1] : memref<1x512x128xbf16, #tpu.memory_space<vmem>>, vector<1x512x128xbf16>
    %1 = vector.shape_cast %0 : vector<1x512x128xbf16> to vector<512x128xbf16>
    %c0_2 = arith.constant 0 : index
    %c0_3 = arith.constant 0 : index
    %2 = vector.load %arg3[%c0_2, %c0_3] : memref<128x128xbf16, #tpu.memory_space<vmem>>, vector<128x128xbf16>
    %cst = arith.constant dense<0.000000e+00> : vector<512x128xf32>
    %3 = tpu.matmul %1, %2, %cst {dimension_numbers = #tpu.dot_dimension_numbers<[1], [1], [0], [0], [0, 0, 1, 0], [], []>} : vector<512x128xbf16>, vector<128x128xbf16>, vector<512x128xf32> -> vector<512x128xf32>
    %c0_4 = arith.constant 0 : index
    %c0_5 = arith.constant 0 : index
    %4 = vector.load %arg4[%c0_4, %c0_5] : memref<512x128xf32, #tpu.memory_space<vmem>>, vector<512x128xf32>
    %5 = arith.addf %3, %4 : vector<512x128xf32>
    %c0_6 = arith.constant 0 : index
    %c0_7 = arith.constant 0 : index
    %c0_8 = arith.constant 0 : index
    %6 = vector.load %arg5[%c0_6, %c0_7, %c0_8] : memref<1x512x128xf32, #tpu.memory_space<vmem>>, vector<1x512x128xf32>
    %7 = vector.shape_cast %6 : vector<1x512x128xf32> to vector<512x128xf32>
    %8 = vector.shape_cast %5 : vector<512x128xf32> to vector<1x512x128xf32>
    tpu.vector_store %arg5[%c0_6, %c0_7, %c0_8], %8 {strides = array<i32>} : memref<1x512x128xf32, #tpu.memory_space<vmem>>, vector<1x512x128xf32>,
    return
  }
  func.func @transform_0(%arg0: i32, %arg1: i32) -> (i32, i32, i32) {
    %c0_i32 = arith.constant 0 : i32
    %c0_i32_0 = arith.constant 0 : i32
    return %arg0, %arg1, %c0_i32 : i32, i32, i32
  }
  func.func @transform_1(%arg0: i32, %arg1: i32) -> (i32, i32) {
    %c0_i32 = arith.constant 0 : i32
    %c0_i32_0 = arith.constant 0 : i32
    %c0_i32_1 = arith.constant 0 : i32
    return %c0_i32, %c0_i32_0 : i32, i32
  }
  func.func @transform_2(%arg0: i32, %arg1: i32) -> (i32, i32) {
    %c0_i32 = arith.constant 0 : i32
    %c0_i32_0 = arith.constant 0 : i32
    return %arg1, %c0_i32 : i32, i32
  }
  func.func @transform_3(%arg0: i32, %arg1: i32) -> (i32, i32, i32) {
    %c0_i32 = arith.constant 0 : i32
    %c0_i32_0 = arith.constant 0 : i32
    return %arg0, %arg1, %c0_i32 : i32, i32, i32
  }
}

</mosaic_0001>

<bundles_post_ra>
// kernel: positional_agent_encoding_fwd.1
= control target key start
LH: loop header
LB: loop body
LE: loop exit
PB: predicated region body
PF: predicated region fallthrough
CT: control target
= control target key end

     0   :  { %8 = vsyncpa [#allocation3], 0  ;;  %s1772_s0 = inlined_call_operand.vmem [shape: bf16[1,1024,128], index: 0, kind: input, shape index: {}]   ;;  %s1773_s1 = inlined_call_operand.vmem [shape: bf16[128,128], index: 1, kind: input, shape index: {}]   ;;  %s1774_s2 = inlined_call_operand.vmem [shape: f32[1024,128], index: 2, kind: input, shape index: {}]   ;;  %s1775_s3 = inlined_call_operand.hbm [shape: f32[1,1024,128], index: 3, kind: output, shape index: {}]  }
   0x1   :  { %10 = vsyncpa [#allocation3 + $0x1], 0  ;;  %s1457_s12 = smov 0   ;;  %s1459_s13 = smov 0  }
   0x2   :  { %s1461_s14 = smov 0   ;;  %s1463_s15 = smov 0  }
   0x3   :  { %s1465_s16 = smov 0   ;;  %s1467_s17 = smov 0  }
   0x4 LB: > { %s1067_s18 = sadd.s32 4294967295, %s1432_s17   ;;  %s1068_s19 = sadd.s32 4294967294, %s1432_s17   ;;  %s1432_s17 = sphi %s1467_s17, %s16_s17   ;;  %s1428_s16 = sphi %s1465_s16, %s1782_s16   ;;  %s1424_s15 = sphi %s1463_s15, %s1781_s15   ;;  %s1420_s14 = sphi %s1461_s14, %s1780_s14   ;;  %s1416_s13 = sphi %s1459_s13, %s1779_s13   ;;  %s1412_s12 = sphi %s1457_s12, %s1778_s12  }
   0x5   : > { %s25_s20 = sadd.s32 1, %s1428_s16  ;;  %s112_s21 = sadd.s32 1, %s1420_s14 }
   0x6   : > { %p26_p0 = scmp.ge.s32.totalorder %s25_s20, 2  ;;  %p122_p1 = scmp.ne.s32.totalorder %s1420_s14, %s1416_s13 }
   0x7   : > { %p123_p2 = scmp.eq.s32.totalorder %s1067_s18, 1  ;;  %p128_p3 = scmp.ne.s32.totalorder %s1416_s13, %s1412_s12 }
   0x8   : > { %s1784_s20 = smov (%p26_p0, %s25_s20), 0  ;;  %p129_p5 = scmp.eq.s32.totalorder %s1068_s19, 1 }
   0x9   : > { %p1497_p4 = por %p123_p2, %p122_p1  ;;  %s108_s23 = ssub.s32 %s1428_s16, %s1784_s20 }
   0xa   : > { %p1071_p6 = scmp.ge.s32.totalorder %s1432_s17, 1  ;;  %p110_p7 = scmp.eq.s32.totalorder %s108_s23, 0 }
   0xb   : > { %p1504_p8 = por %p129_p5, %p128_p3  ;;  %p172_p9 = scmp.lt.s32.totalorder %s1432_s17, 3 }
   0xc   : > { %s1510_s25 = scalar_select %p110_p7, %s1420_s14, %s112_s21  }
   0xd   : > { %p173_p10 = pnand %p1071_p6, %p172_p9 }
   0xe   : > { %s1073_s28 = sshll.u32 (!%p173_p10), %s1424_s15, 6  ;;  %s202_s5 = sand.u32 (!%p173_p10), 1, %s1416_s13  }
   0xf   : > { %176 = sbr.rel (%p173_p10) target bundleno = 356 (0x164), region = 32  ;;  %p208_p11 = scmp.lt.s32.totalorder (!%p173_p10), %s1073_s28, 127 }
  0x10   : > { %s1072_s10 = sshll.u32 (!%p173_p10), %s202_s5, 9  ;;  %s1434_s26 = smov (!%p173_p10), [#allocation2]  }
  0x11   : > { %s1360_s27 = sshll.u32 (!%p173_p10), %s1434_s26, 4  ;;  %s1361_s27 = int_to_ptr.vmem [resolvable:$false] %s1360_s27 }
  0x12   : > { %s1362_s29 = scalar_lea.vmem (!%p173_p10), %s1361_s27, 16384 }
  0x14   : > { %v1316_v0 = vld [vmem:[%s1773_s1 + $0x38] sm:$0xff]   ;;  %v1317_v1 = vld [vmem:[%s1773_s1 + $0x30] sm:$0xff]   ;;  %s1786_s28 = smov (!%p208_p11, %s1073_s28), 127  ;;  %v1318_v2 = vld [vmem:[%s1773_s1 + $0x28] sm:$0xff]  }
  0x15   : > { %1163 = vmatprep.subr.bf16.mxu0 %v1316_v0  ;;  %1243 = vmatprep.subr.bf16.mxu1 %v1316_v0  ;;  %s1074_s4 = sshll.u32 %s1786_s28, 2  ;;  %v1319_v5 = vld [vmem:[%s1773_s1 + $0x20] sm:$0xff]   ;;  %v1320_v6 = vld [vmem:[%s1773_s1 + $0x18] sm:$0xff]   ;;  %v1321_v7 = vld [vmem:[%s1773_s1 + $0x10] sm:$0xff]  }
  0x16   : > { %1164 = vmatpush3.bf16.xpose.msra.mxu0 %v1316_v0  ;;  %1251 = vmatpush3.bf16.xpose.msra.mxu1 %v1316_v0  ;;  %s1525_s7 = scalar_lea.vmem %s1772_s0, %s1074_s4  ;;  %v1322_v8 = vld [vmem:[%s1773_s1 + $0x8] sm:$0xff]   ;;  %v1323_v9 = vld [vmem:[%s1773_s1] sm:$0xff]   ;;  %s1076_s4 = sshll.u32 %s1786_s28, 3 }
  0x17   : > { %1165 = vmatprep.subr.bf16.mxu0 %v1317_v1  ;;  %1244 = vmatprep.subr.bf16.mxu1 %v1317_v1  ;;  %v1324_v3 = vld [vmem:[%s1525_s7] sm:$0xff]   ;;  %v1326_v10 = vld [vmem:[%s1525_s7 + $0x8] sm:$0xff]   ;;  %v1328_v12 = vld [vmem:[%s1525_s7 + $0x10] sm:$0xff]   ;;  %s1582_s9 = scalar_lea.vmem %s1774_s2, %s1076_s4  ;;  %s1592_s28 = scalar_lea.vmem [#allocation2], %s1072_s10 }
  0x18   : > { %v1325_v4 = vld [vmem:[%s1525_s7 + $0x80] sm:$0xff]   ;;  %1179 = vmatprep.mubr.bf16.mxu0 %v1324_v3  ;;  %v1327_v11 = vld [vmem:[%s1525_s7 + $0x88] sm:$0xff]   ;;  %v1329_v13 = vld [vmem:[%s1525_s7 + $0x90] sm:$0xff]   ;;  %s976_s11 = sshll.u32 %s1592_s28, 4  ;;  %s1719_s11 = int_to_ptr.vmem [resolvable:$true] %s976_s11 }
  0x19   : > { %1211 = vmatprep.mubr.bf16.mxu1 %v1325_v4  ;;  %v1330_v14 = vld [vmem:[%s1525_s7 + $0x18] sm:$0xff]   ;;  %v1332_v16 = vld [vmem:[%s1525_s7 + $0x20] sm:$0xff]   ;;  %v1334_v18 = vld [vmem:[%s1525_s7 + $0x28] sm:$0xff]   ;;  %s1356_s23 = scalar_lea.vmem %s1719_s11, 8192  ;;  %p1363_p1 = scmp.lt.s32.totalorder %s1719_s11, %s1361_s27 }
  0x1a   : > { %v1331_v15 = vld [vmem:[%s1525_s7 + $0x98] sm:$0xff]   ;;  %v1333_v17 = vld [vmem:[%s1525_s7 + $0xa0] sm:$0xff]   ;;  %v1335_v19 = vld [vmem:[%s1525_s7 + $0xa8] sm:$0xff]   ;;  %p1357_p12 = scmp.ne.s32.totalorder %s1719_s11, %s1356_s23  ;;  %p1364_p2 = scmp.lt.s32.totalorder %s1362_s29, %s1356_s23 }
  0x1b   : > { %v1336_v20 = vld [vmem:[%s1525_s7 + $0x30] sm:$0xff]   ;;  %v1338_v22 = vld [vmem:[%s1525_s7 + $0x38] sm:$0xff]   ;;  %v1340_v24 = vld [vmem:[%s1525_s7 + $0x40] sm:$0xff]  }
  0x1c   : > { %v1337_v21 = vld [vmem:[%s1525_s7 + $0xb0] sm:$0xff]   ;;  %v1339_v23 = vld [vmem:[%s1525_s7 + $0xb8] sm:$0xff]   ;;  %v1341_v25 = vld [vmem:[%s1525_s7 + $0xc0] sm:$0xff]   ;;  %p1358_p13 = pnand %p1357_p12, %p1497_p4  ;;  %p1365_p3 = por %p1364_p2, %p1363_p1 }
  0x1d   : > { %v1342_v26 = vld [vmem:[%s1525_s7 + $0x48] sm:$0xff]   ;;  %v1344_v28 = vld [vmem:[%s1525_s7 + $0x50] sm:$0xff]   ;;  %v1346_v30 = vld [vmem:[%s1525_s7 + $0x58] sm:$0xff]  }
  0x1e   : > { %1166 = vmatpush3.bf16.xpose.msra.mxu0 %v1317_v1  ;;  %1252 = vmatpush3.bf16.xpose.msra.mxu1 %v1317_v1  ;;  %v1343_v27 = vld [vmem:[%s1525_s7 + $0xc8] sm:$0xff]   ;;  %v1345_v29 = vld [vmem:[%s1525_s7 + $0xd0] sm:$0xff]   ;;  %v1347_v31 = vld [vmem:[%s1525_s7 + $0xd8] sm:$0xff]   ;;  %p1359_p0 = pneg %p1358_p13 }
  0x1f   : > { %1167 = vmatprep.subr.bf16.mxu0 %v1318_v2  ;;  %1245 = vmatprep.subr.bf16.mxu1 %v1318_v2  ;;  %v1348_v32 = vld [vmem:[%s1525_s7 + $0x60] sm:$0xff]   ;;  %v1350_v34 = vld [vmem:[%s1525_s7 + $0x68] sm:$0xff]   ;;  %v1352_v36 = vld [vmem:[%s1525_s7 + $0x70] sm:$0xff]  }
  0x20   : > { %v1349_v33 = vld [vmem:[%s1525_s7 + $0xe0] sm:$0xff]   ;;  %v1351_v35 = vld [vmem:[%s1525_s7 + $0xe8] sm:$0xff]   ;;  %v1353_v37 = vld [vmem:[%s1525_s7 + $0xf0] sm:$0xff]   ;;  %p1366_p5 = pnand %p1365_p3, %p1359_p0 }
  0x21   : > { %v1354_v38 = vld [vmem:[%s1525_s7 + $0x78] sm:$0xff]   ;;  %v305_v40 = vld [vmem:[%s1582_s9 + $0x10] sm:$0xff]  ;;  %v303_v44 = vld [vmem:[%s1582_s9] sm:$0xff] }
  0x22   : > { %v1355_v39 = vld [vmem:[%s1525_s7 + $0xf8] sm:$0xff]   ;;  %v337_v41 = vld [vmem:[%s1582_s9 + $0x110] sm:$0xff]  ;;  %v335_v45 = vld [vmem:[%s1582_s9 + $0x100] sm:$0xff]  ;;  %s1122_s7 = sshll.u32 %s1424_s15, 13  ;;  %s1727_s15 = scalar_lea.sflag [#allocation3], %s202_s5 }
  0x23   : > { %v306_v50 = vld [vmem:[%s1582_s9 + $0x18] sm:$0xff]  ;;  %v304_v56 = vld [vmem:[%s1582_s9 + $0x8] sm:$0xff]  ;;  %v309_v62 = vld [vmem:[%s1582_s9 + $0x30] sm:$0xff]  ;;  %s1717_s21 = scalar_lea.hbm %s1775_s3, %s1122_s7 }
  0x24   : > { %v338_v51 = vld [vmem:[%s1582_s9 + $0x118] sm:$0xff]  ;;  %v336_v57 = vld [vmem:[%s1582_s9 + $0x108] sm:$0xff]  ;;  %v341_v63 = vld [vmem:[%s1582_s9 + $0x130] sm:$0xff] }
  0x25   : > { %v307_v4 = vld [vmem:[%s1582_s9 + $0x20] sm:$0xff] }
  0x26   : > { %1168 = vmatpush3.bf16.xpose.msra.mxu0 %v1318_v2  ;;  %1253 = vmatpush3.bf16.xpose.msra.mxu1 %v1318_v2 }
  0x27   : > { %1169 = vmatprep.subr.bf16.mxu0 %v1319_v5  ;;  %1246 = vmatprep.subr.bf16.mxu1 %v1319_v5 }
  0x2e   : > { %1170 = vmatpush3.bf16.xpose.msra.mxu0 %v1319_v5  ;;  %1254 = vmatpush3.bf16.xpose.msra.mxu1 %v1319_v5  ;;  %v339_v5 = vld [vmem:[%s1582_s9 + $0x120] sm:$0xff] }
  0x2f   : > { %1171 = vmatprep.subr.bf16.mxu0 %v1320_v6  ;;  %1247 = vmatprep.subr.bf16.mxu1 %v1320_v6 }
  0x36   : > { %1172 = vmatpush3.bf16.xpose.msra.mxu0 %v1320_v6  ;;  %1255 = vmatpush3.bf16.xpose.msra.mxu1 %v1320_v6 }
  0x37   : > { %1173 = vmatprep.subr.bf16.mxu0 %v1321_v7  ;;  %1248 = vmatprep.subr.bf16.mxu1 %v1321_v7 }
  0x3e   : > { %1174 = vmatpush3.bf16.xpose.msra.mxu0 %v1321_v7  ;;  %1256 = vmatpush3.bf16.xpose.msra.mxu1 %v1321_v7 }
  0x3f   : > { %1175 = vmatprep.subr.bf16.mxu0 %v1322_v8  ;;  %1249 = vmatprep.subr.bf16.mxu1 %v1322_v8 }
  0x46   : > { %1176 = vmatpush3.bf16.xpose.msra.mxu0 %v1322_v8  ;;  %1257 = vmatpush3.bf16.xpose.msra.mxu1 %v1322_v8 }
  0x47   : > { %1177 = vmatprep.subr.bf16.mxu0 %v1323_v9  ;;  %1250 = vmatprep.subr.bf16.mxu1 %v1323_v9 }
  0x4e   : > { %1178 = vmatpush3.bf16.xpose.msra.mxu0 %v1323_v9  ;;  %1258 = vmatpush3.bf16.xpose.msra.mxu1 %v1323_v9 }
  0x55   : > { %1180 = vmatmul.mubr.bf16.vlgmr.msra.gmra.mxu0 %v1326_v10  ;;  %1212 = vmatmul.mubr.bf16.vlgmr.msra.gmra.mxu1 %v1327_v11  ;;  %v310_v10 = vld [vmem:[%s1582_s9 + $0x38] sm:$0xff] }
  0x56   : > { %1183 = vmatprep.mubr.bf16.mxu0 %v1328_v12  ;;  %1215 = vmatprep.mubr.bf16.mxu1 %v1329_v13  ;;  %v342_v11 = vld [vmem:[%s1582_s9 + $0x138] sm:$0xff] }
  0x5d   : > { %1184 = vmatmul.mubr.bf16.gmra.mxu0 %v1330_v14  ;;  %1216 = vmatmul.mubr.bf16.gmra.mxu1 %v1331_v15 }
  0x5e   : > { %1187 = vmatprep.mubr.bf16.mxu0 %v1332_v16  ;;  %1219 = vmatprep.mubr.bf16.mxu1 %v1333_v17  ;;  %v308_v16 = vld [vmem:[%s1582_s9 + $0x28] sm:$0xff] }
  0x5f   : > { %v340_v17 = vld [vmem:[%s1582_s9 + $0x128] sm:$0xff] }
  0x65   : > { %1188 = vmatmul.mubr.bf16.gmra.mxu0 %v1334_v18  ;;  %1220 = vmatmul.mubr.bf16.gmra.mxu1 %v1335_v19 }
  0x66   : > { %1191 = vmatprep.mubr.bf16.mxu0 %v1336_v20  ;;  %1223 = vmatprep.mubr.bf16.mxu1 %v1337_v21 }
  0x6d   : > { %1192 = vmatmul.mubr.bf16.gmra.mxu0 %v1338_v22  ;;  %1224 = vmatmul.mubr.bf16.gmra.mxu1 %v1339_v23  ;;  %v313_v22 = vld [vmem:[%s1582_s9 + $0x50] sm:$0xff] }
  0x6e   : > { %1195 = vmatprep.mubr.bf16.mxu0 %v1340_v24  ;;  %1227 = vmatprep.mubr.bf16.mxu1 %v1341_v25  ;;  %v345_v23 = vld [vmem:[%s1582_s9 + $0x150] sm:$0xff] }
  0x75   : > { %1196 = vmatmul.mubr.bf16.gmra.mxu0 %v1342_v26  ;;  %1228 = vmatmul.mubr.bf16.gmra.mxu1 %v1343_v27 }
  0x76   : > { %1199 = vmatprep.mubr.bf16.mxu0 %v1344_v28  ;;  %1231 = vmatprep.mubr.bf16.mxu1 %v1345_v29  ;;  %v311_v28 = vld [vmem:[%s1582_s9 + $0x40] sm:$0xff] }
  0x77   : > { %v343_v29 = vld [vmem:[%s1582_s9 + $0x140] sm:$0xff] }
  0x7d   : > { %1200 = vmatmul.mubr.bf16.gmra.mxu0 %v1346_v30  ;;  %1232 = vmatmul.mubr.bf16.gmra.mxu1 %v1347_v31 }
  0x7e   : > { %1203 = vmatprep.mubr.bf16.mxu0 %v1348_v32  ;;  %1235 = vmatprep.mubr.bf16.mxu1 %v1349_v33 }
  0x85   : > { %1204 = vmatmul.mubr.bf16.gmra.mxu0 %v1350_v34  ;;  %1236 = vmatmul.mubr.bf16.gmra.mxu1 %v1351_v35  ;;  %v314_v34 = vld [vmem:[%s1582_s9 + $0x58] sm:$0xff] }
  0x86   : > { %1207 = vmatprep.mubr.bf16.mxu0 %v1352_v36  ;;  %1239 = vmatprep.mubr.bf16.mxu1 %v1353_v37  ;;  %v346_v35 = vld [vmem:[%s1582_s9 + $0x158] sm:$0xff] }
  0x8d   : > { %1208 = vmatmul.mubr.bf16.gmra.mxu0 %v1354_v38  ;;  %1240 = vmatmul.mubr.bf16.gmra.mxu1 %v1355_v39 }
 0x115   : > { %v1181_v42 = vpop.f32.mrf.mxu0  ;;  %v1213_v43 = vpop.f32.mrf.mxu1 }
 0x116   : > { %v650_v46 = vadd.f32 %v1181_v42, %v305_v40  ;;  %v778_v47 = vadd.f32 %v1213_v43, %v337_v41  ;;  %v312_v40 = vld [vmem:[%s1582_s9 + $0x48] sm:$0xff] }
 0x117   : > { %v641_v48 = vpop.f32.mrf.mxu0  ;;  %v769_v49 = vpop.f32.mrf.mxu1  ;;  %v344_v41 = vld [vmem:[%s1582_s9 + $0x148] sm:$0xff] }
 0x118   : > { %898 = vst [vmem:[%s1592_s28 + $0x10] sm:$0xff] %v650_v46  ;;  %930 = vst [vmem:[%s1592_s28 + $0x110] sm:$0xff] %v778_v47  ;;  %v642_v52 = vadd.f32 %v641_v48, %v303_v44  ;;  %v770_v53 = vadd.f32 %v769_v49, %v335_v45  ;;  %v317_v46 = vld [vmem:[%s1582_s9 + $0x70] sm:$0xff] }
 0x119   : > { %v1182_v54 = vpop.f32.mrf.mxu0  ;;  %v1214_v55 = vpop.f32.mrf.mxu1  ;;  %v349_v47 = vld [vmem:[%s1582_s9 + $0x170] sm:$0xff] }
 0x11a   : > { %896 = vst [vmem:[%s1592_s28] sm:$0xff] %v642_v52  ;;  %928 = vst [vmem:[%s1592_s28 + $0x100] sm:$0xff] %v770_v53  ;;  %v653_v58 = vadd.f32 %v1182_v54, %v306_v50  ;;  %v781_v59 = vadd.f32 %v1214_v55, %v338_v51  ;;  %v315_v52 = vld [vmem:[%s1582_s9 + $0x60] sm:$0xff] }
 0x11b   : > { %v644_v60 = vpop.f32.mrf.mxu0  ;;  %v772_v61 = vpop.f32.mrf.mxu1  ;;  %v347_v53 = vld [vmem:[%s1582_s9 + $0x160] sm:$0xff] }
 0x11c   : > { %899 = vst [vmem:[%s1592_s28 + $0x18] sm:$0xff] %v653_v58  ;;  %931 = vst [vmem:[%s1592_s28 + $0x118] sm:$0xff] %v781_v59  ;;  %v645_v0 = vadd.f32 %v644_v60, %v304_v56  ;;  %v773_v1 = vadd.f32 %v772_v61, %v336_v57  ;;  %v318_v58 = vld [vmem:[%s1582_s9 + $0x78] sm:$0xff] }
 0x11d   : > { %v1185_v2 = vpop.f32.mrf.mxu0  ;;  %v1217_v3 = vpop.f32.mrf.mxu1  ;;  %v350_v59 = vld [vmem:[%s1582_s9 + $0x178] sm:$0xff] }
 0x11e   : > { %897 = vst [vmem:[%s1592_s28 + $0x8] sm:$0xff] %v645_v0  ;;  %929 = vst [vmem:[%s1592_s28 + $0x108] sm:$0xff] %v773_v1  ;;  %v666_v6 = vadd.f32 %v1185_v2, %v309_v62  ;;  %v794_v7 = vadd.f32 %v1217_v3, %v341_v63  ;;  %v316_v0 = vld [vmem:[%s1582_s9 + $0x68] sm:$0xff] }
 0x11f   : > { %v657_v8 = vpop.f32.mrf.mxu0  ;;  %v785_v9 = vpop.f32.mrf.mxu1  ;;  %v348_v1 = vld [vmem:[%s1582_s9 + $0x168] sm:$0xff] }
 0x120   : > { %902 = vst [vmem:[%s1592_s28 + $0x30] sm:$0xff] %v666_v6  ;;  %934 = vst [vmem:[%s1592_s28 + $0x130] sm:$0xff] %v794_v7  ;;  %v658_v12 = vadd.f32 %v657_v8, %v307_v4  ;;  %v786_v13 = vadd.f32 %v785_v9, %v339_v5  ;;  %v321_v6 = vld [vmem:[%s1582_s9 + $0x90] sm:$0xff] }
 0x121   : > { %v1186_v14 = vpop.f32.mrf.mxu0  ;;  %v1218_v15 = vpop.f32.mrf.mxu1  ;;  %v353_v7 = vld [vmem:[%s1582_s9 + $0x190] sm:$0xff] }
 0x122   : > { %900 = vst [vmem:[%s1592_s28 + $0x20] sm:$0xff] %v658_v12  ;;  %932 = vst [vmem:[%s1592_s28 + $0x120] sm:$0xff] %v786_v13  ;;  %v669_v18 = vadd.f32 %v1186_v14, %v310_v10  ;;  %v797_v19 = vadd.f32 %v1218_v15, %v342_v11  ;;  %v319_v12 = vld [vmem:[%s1582_s9 + $0x80] sm:$0xff] }
 0x123   : > { %v660_v20 = vpop.f32.mrf.mxu0  ;;  %v788_v21 = vpop.f32.mrf.mxu1  ;;  %v351_v13 = vld [vmem:[%s1582_s9 + $0x180] sm:$0xff] }
 0x124   : > { %903 = vst [vmem:[%s1592_s28 + $0x38] sm:$0xff] %v669_v18  ;;  %935 = vst [vmem:[%s1592_s28 + $0x138] sm:$0xff] %v797_v19  ;;  %v661_v24 = vadd.f32 %v660_v20, %v308_v16  ;;  %v789_v25 = vadd.f32 %v788_v21, %v340_v17  ;;  %v322_v18 = vld [vmem:[%s1582_s9 + $0x98] sm:$0xff] }
 0x125   : > { %v1189_v26 = vpop.f32.mrf.mxu0  ;;  %v1221_v27 = vpop.f32.mrf.mxu1  ;;  %v354_v19 = vld [vmem:[%s1582_s9 + $0x198] sm:$0xff] }
 0x126   : > { %901 = vst [vmem:[%s1592_s28 + $0x28] sm:$0xff] %v661_v24  ;;  %933 = vst [vmem:[%s1592_s28 + $0x128] sm:$0xff] %v789_v25  ;;  %v682_v30 = vadd.f32 %v1189_v26, %v313_v22  ;;  %v810_v31 = vadd.f32 %v1221_v27, %v345_v23  ;;  %v320_v24 = vld [vmem:[%s1582_s9 + $0x88] sm:$0xff] }
 0x127   : > { %v673_v32 = vpop.f32.mrf.mxu0  ;;  %v801_v33 = vpop.f32.mrf.mxu1  ;;  %v352_v25 = vld [vmem:[%s1582_s9 + $0x188] sm:$0xff] }
 0x128   : > { %906 = vst [vmem:[%s1592_s28 + $0x50] sm:$0xff] %v682_v30  ;;  %938 = vst [vmem:[%s1592_s28 + $0x150] sm:$0xff] %v810_v31  ;;  %v674_v36 = vadd.f32 %v673_v32, %v311_v28  ;;  %v802_v37 = vadd.f32 %v801_v33, %v343_v29  ;;  %v325_v30 = vld [vmem:[%s1582_s9 + $0xb0] sm:$0xff] }
 0x129   : > { %v1190_v38 = vpop.f32.mrf.mxu0  ;;  %v1222_v39 = vpop.f32.mrf.mxu1  ;;  %v357_v31 = vld [vmem:[%s1582_s9 + $0x1b0] sm:$0xff] }
 0x12a   : > { %904 = vst [vmem:[%s1592_s28 + $0x40] sm:$0xff] %v674_v36  ;;  %936 = vst [vmem:[%s1592_s28 + $0x140] sm:$0xff] %v802_v37  ;;  %v685_v42 = vadd.f32 %v1190_v38, %v314_v34  ;;  %v813_v43 = vadd.f32 %v1222_v39, %v346_v35  ;;  %v323_v36 = vld [vmem:[%s1582_s9 + $0xa0] sm:$0xff] }
 0x12b   : > { %v676_v44 = vpop.f32.mrf.mxu0  ;;  %v804_v45 = vpop.f32.mrf.mxu1  ;;  %v355_v37 = vld [vmem:[%s1582_s9 + $0x1a0] sm:$0xff] }
 0x12c   : > { %907 = vst [vmem:[%s1592_s28 + $0x58] sm:$0xff] %v685_v42  ;;  %939 = vst [vmem:[%s1592_s28 + $0x158] sm:$0xff] %v813_v43  ;;  %v677_v48 = vadd.f32 %v676_v44, %v312_v40  ;;  %v805_v49 = vadd.f32 %v804_v45, %v344_v41  ;;  %v326_v42 = vld [vmem:[%s1582_s9 + $0xb8] sm:$0xff] }
 0x12d   : > { %v1193_v50 = vpop.f32.mrf.mxu0  ;;  %v1225_v51 = vpop.f32.mrf.mxu1  ;;  %v358_v43 = vld [vmem:[%s1582_s9 + $0x1b8] sm:$0xff] }
 0x12e   : > { %905 = vst [vmem:[%s1592_s28 + $0x48] sm:$0xff] %v677_v48  ;;  %937 = vst [vmem:[%s1592_s28 + $0x148] sm:$0xff] %v805_v49  ;;  %v698_v54 = vadd.f32 %v1193_v50, %v317_v46  ;;  %v826_v55 = vadd.f32 %v1225_v51, %v349_v47  ;;  %v324_v48 = vld [vmem:[%s1582_s9 + $0xa8] sm:$0xff] }
 0x12f   : > { %v689_v56 = vpop.f32.mrf.mxu0  ;;  %v817_v57 = vpop.f32.mrf.mxu1  ;;  %v356_v49 = vld [vmem:[%s1582_s9 + $0x1a8] sm:$0xff] }
 0x130   : > { %910 = vst [vmem:[%s1592_s28 + $0x70] sm:$0xff] %v698_v54  ;;  %942 = vst [vmem:[%s1592_s28 + $0x170] sm:$0xff] %v826_v55  ;;  %v690_v60 = vadd.f32 %v689_v56, %v315_v52  ;;  %v818_v61 = vadd.f32 %v817_v57, %v347_v53  ;;  %v329_v54 = vld [vmem:[%s1582_s9 + $0xd0] sm:$0xff] }
 0x131   : > { %v1194_v62 = vpop.f32.mrf.mxu0  ;;  %v1226_v63 = vpop.f32.mrf.mxu1  ;;  %v361_v55 = vld [vmem:[%s1582_s9 + $0x1d0] sm:$0xff] }
 0x132   : > { %908 = vst [vmem:[%s1592_s28 + $0x60] sm:$0xff] %v690_v60  ;;  %940 = vst [vmem:[%s1592_s28 + $0x160] sm:$0xff] %v818_v61  ;;  %v701_v2 = vadd.f32 %v1194_v62, %v318_v58  ;;  %v829_v3 = vadd.f32 %v1226_v63, %v350_v59  ;;  %v327_v60 = vld [vmem:[%s1582_s9 + $0xc0] sm:$0xff] }
 0x133   : > { %v692_v4 = vpop.f32.mrf.mxu0  ;;  %v820_v5 = vpop.f32.mrf.mxu1  ;;  %v359_v61 = vld [vmem:[%s1582_s9 + $0x1c0] sm:$0xff] }
 0x134   : > { %911 = vst [vmem:[%s1592_s28 + $0x78] sm:$0xff] %v701_v2  ;;  %943 = vst [vmem:[%s1592_s28 + $0x178] sm:$0xff] %v829_v3  ;;  %v693_v8 = vadd.f32 %v692_v4, %v316_v0  ;;  %v821_v9 = vadd.f32 %v820_v5, %v348_v1  ;;  %v330_v2 = vld [vmem:[%s1582_s9 + $0xd8] sm:$0xff] }
 0x135   : > { %v1197_v10 = vpop.f32.mrf.mxu0  ;;  %v1229_v11 = vpop.f32.mrf.mxu1  ;;  %v362_v3 = vld [vmem:[%s1582_s9 + $0x1d8] sm:$0xff] }
 0x136   : > { %909 = vst [vmem:[%s1592_s28 + $0x68] sm:$0xff] %v693_v8  ;;  %941 = vst [vmem:[%s1592_s28 + $0x168] sm:$0xff] %v821_v9  ;;  %v714_v14 = vadd.f32 %v1197_v10, %v321_v6  ;;  %v842_v15 = vadd.f32 %v1229_v11, %v353_v7  ;;  %v328_v8 = vld [vmem:[%s1582_s9 + $0xc8] sm:$0xff] }
 0x137   : > { %v705_v16 = vpop.f32.mrf.mxu0  ;;  %v833_v17 = vpop.f32.mrf.mxu1  ;;  %v360_v9 = vld [vmem:[%s1582_s9 + $0x1c8] sm:$0xff] }
 0x138   : > { %914 = vst [vmem:[%s1592_s28 + $0x90] sm:$0xff] %v714_v14  ;;  %946 = vst [vmem:[%s1592_s28 + $0x190] sm:$0xff] %v842_v15  ;;  %v706_v20 = vadd.f32 %v705_v16, %v319_v12  ;;  %v834_v21 = vadd.f32 %v833_v17, %v351_v13  ;;  %v333_v14 = vld [vmem:[%s1582_s9 + $0xf0] sm:$0xff] }
 0x139   : > { %v1198_v22 = vpop.f32.mrf.mxu0  ;;  %v1230_v23 = vpop.f32.mrf.mxu1  ;;  %v365_v15 = vld [vmem:[%s1582_s9 + $0x1f0] sm:$0xff] }
 0x13a   : > { %912 = vst [vmem:[%s1592_s28 + $0x80] sm:$0xff] %v706_v20  ;;  %944 = vst [vmem:[%s1592_s28 + $0x180] sm:$0xff] %v834_v21  ;;  %v717_v26 = vadd.f32 %v1198_v22, %v322_v18  ;;  %v845_v27 = vadd.f32 %v1230_v23, %v354_v19  ;;  %v331_v20 = vld [vmem:[%s1582_s9 + $0xe0] sm:$0xff] }
 0x13b   : > { %v708_v28 = vpop.f32.mrf.mxu0  ;;  %v836_v29 = vpop.f32.mrf.mxu1  ;;  %v363_v21 = vld [vmem:[%s1582_s9 + $0x1e0] sm:$0xff] }
 0x13c   : > { %915 = vst [vmem:[%s1592_s28 + $0x98] sm:$0xff] %v717_v26  ;;  %947 = vst [vmem:[%s1592_s28 + $0x198] sm:$0xff] %v845_v27  ;;  %v709_v32 = vadd.f32 %v708_v28, %v320_v24  ;;  %v837_v33 = vadd.f32 %v836_v29, %v352_v25  ;;  %v334_v26 = vld [vmem:[%s1582_s9 + $0xf8] sm:$0xff] }
 0x13d   : > { %v1201_v34 = vpop.f32.mrf.mxu0  ;;  %v1233_v35 = vpop.f32.mrf.mxu1  ;;  %v366_v27 = vld [vmem:[%s1582_s9 + $0x1f8] sm:$0xff] }
 0x13e   : > { %913 = vst [vmem:[%s1592_s28 + $0x88] sm:$0xff] %v709_v32  ;;  %945 = vst [vmem:[%s1592_s28 + $0x188] sm:$0xff] %v837_v33  ;;  %v730_v38 = vadd.f32 %v1201_v34, %v325_v30  ;;  %v858_v39 = vadd.f32 %v1233_v35, %v357_v31  ;;  %v332_v32 = vld [vmem:[%s1582_s9 + $0xe8] sm:$0xff] }
 0x13f   : > { %v721_v40 = vpop.f32.mrf.mxu0  ;;  %v849_v41 = vpop.f32.mrf.mxu1  ;;  %v364_v33 = vld [vmem:[%s1582_s9 + $0x1e8] sm:$0xff] }
 0x140   : > { %918 = vst [vmem:[%s1592_s28 + $0xb0] sm:$0xff] %v730_v38  ;;  %950 = vst [vmem:[%s1592_s28 + $0x1b0] sm:$0xff] %v858_v39  ;;  %v722_v44 = vadd.f32 %v721_v40, %v323_v36  ;;  %v850_v45 = vadd.f32 %v849_v41, %v355_v37 }
 0x141   : > { %v1202_v46 = vpop.f32.mrf.mxu0  ;;  %v1234_v47 = vpop.f32.mrf.mxu1 }
 0x142   : > { %916 = vst [vmem:[%s1592_s28 + $0xa0] sm:$0xff] %v722_v44  ;;  %948 = vst [vmem:[%s1592_s28 + $0x1a0] sm:$0xff] %v850_v45  ;;  %v733_v50 = vadd.f32 %v1202_v46, %v326_v42  ;;  %v861_v51 = vadd.f32 %v1234_v47, %v358_v43 }
 0x143   : > { %v724_v52 = vpop.f32.mrf.mxu0  ;;  %v852_v53 = vpop.f32.mrf.mxu1 }
 0x144   : > { %919 = vst [vmem:[%s1592_s28 + $0xb8] sm:$0xff] %v733_v50  ;;  %951 = vst [vmem:[%s1592_s28 + $0x1b8] sm:$0xff] %v861_v51  ;;  %v725_v56 = vadd.f32 %v724_v52, %v324_v48  ;;  %v853_v57 = vadd.f32 %v852_v53, %v356_v49 }
 0x145   : > { %v1205_v58 = vpop.f32.mrf.mxu0  ;;  %v1237_v59 = vpop.f32.mrf.mxu1 }
 0x146   : > { %917 = vst [vmem:[%s1592_s28 + $0xa8] sm:$0xff] %v725_v56  ;;  %949 = vst [vmem:[%s1592_s28 + $0x1a8] sm:$0xff] %v853_v57  ;;  %v746_v62 = vadd.f32 %v1205_v58, %v329_v54  ;;  %v874_v63 = vadd.f32 %v1237_v59, %v361_v55 }
 0x147   : > { %v737_v0 = vpop.f32.mrf.mxu0  ;;  %v865_v1 = vpop.f32.mrf.mxu1 }
 0x148   : > { %922 = vst [vmem:[%s1592_s28 + $0xd0] sm:$0xff] %v746_v62  ;;  %954 = vst [vmem:[%s1592_s28 + $0x1d0] sm:$0xff] %v874_v63  ;;  %v738_v4 = vadd.f32 %v737_v0, %v327_v60  ;;  %v866_v5 = vadd.f32 %v865_v1, %v359_v61 }
 0x149   : > { %v1206_v6 = vpop.f32.mrf.mxu0  ;;  %v1238_v7 = vpop.f32.mrf.mxu1 }
 0x14a   : > { %920 = vst [vmem:[%s1592_s28 + $0xc0] sm:$0xff] %v738_v4  ;;  %952 = vst [vmem:[%s1592_s28 + $0x1c0] sm:$0xff] %v866_v5  ;;  %v749_v10 = vadd.f32 %v1206_v6, %v330_v2  ;;  %v877_v11 = vadd.f32 %v1238_v7, %v362_v3 }
 0x14b   : > { %v740_v12 = vpop.f32.mrf.mxu0  ;;  %v868_v13 = vpop.f32.mrf.mxu1 }
 0x14c   : > { %923 = vst [vmem:[%s1592_s28 + $0xd8] sm:$0xff] %v749_v10  ;;  %955 = vst [vmem:[%s1592_s28 + $0x1d8] sm:$0xff] %v877_v11  ;;  %v741_v16 = vadd.f32 %v740_v12, %v328_v8  ;;  %v869_v17 = vadd.f32 %v868_v13, %v360_v9 }
 0x14d   : > { %v1209_v18 = vpop.f32.mrf.mxu0  ;;  %v1241_v19 = vpop.f32.mrf.mxu1 }
 0x14e   : > { %921 = vst [vmem:[%s1592_s28 + $0xc8] sm:$0xff] %v741_v16  ;;  %953 = vst [vmem:[%s1592_s28 + $0x1c8] sm:$0xff] %v869_v17  ;;  %v762_v22 = vadd.f32 %v1209_v18, %v333_v14  ;;  %v890_v23 = vadd.f32 %v1241_v19, %v365_v15 }
 0x14f   : > { %v753_v24 = vpop.f32.mrf.mxu0  ;;  %v881_v25 = vpop.f32.mrf.mxu1 }
 0x150   : > { %926 = vst [vmem:[%s1592_s28 + $0xf0] sm:$0xff] %v762_v22  ;;  %958 = vst [vmem:[%s1592_s28 + $0x1f0] sm:$0xff] %v890_v23  ;;  %v754_v28 = vadd.f32 %v753_v24, %v331_v20  ;;  %v882_v29 = vadd.f32 %v881_v25, %v363_v21 }
 0x151   : > { %v1210_v30 = vpop.f32.mrf.mxu0  ;;  %v1242_v31 = vpop.f32.mrf.mxu1 }
 0x152   : > { %924 = vst [vmem:[%s1592_s28 + $0xe0] sm:$0xff] %v754_v28  ;;  %956 = vst [vmem:[%s1592_s28 + $0x1e0] sm:$0xff] %v882_v29  ;;  %v765_v34 = vadd.f32 %v1210_v30, %v334_v26  ;;  %v893_v35 = vadd.f32 %v1242_v31, %v366_v27 }
 0x153   : > { %v756_v36 = vpop.f32.mrf.mxu0  ;;  %v884_v37 = vpop.f32.mrf.mxu1 }
 0x154   : > { %927 = vst [vmem:[%s1592_s28 + $0xf8] sm:$0xff] %v765_v34  ;;  %959 = vst [vmem:[%s1592_s28 + $0x1f8] sm:$0xff] %v893_v35  ;;  %v757_v38 = vadd.f32 %v756_v36, %v332_v32  ;;  %v885_v39 = vadd.f32 %v884_v37, %v364_v33 }
 0x156   : > { %925 = vst [vmem:[%s1592_s28 + $0xe8] sm:$0xff] %v757_v38  ;;  %957 = vst [vmem:[%s1592_s28 + $0x1e8] sm:$0xff] %v885_v39 }
 0x157   : > { %1369 = shalt.err (!%p1366_p5)
}
 0x158   : > { %s1370_s30 = scalar_lea.hbm %s1717_s21, 8192  ;;  %s1374_s6 = scalar_lea.hbm %s1775_s3, 16384 }
 0x159   : > { %p1371_p6 = scmp.ne.s32.totalorder %s1717_s21, %s1370_s30  ;;  %p1375_p10 = scmp.lt.s32.totalorder %s1717_s21, %s1775_s3 }
 0x15a   : > { %p1376_p11 = scmp.lt.s32.totalorder %s1374_s6, %s1370_s30 }
 0x15b   : > { %p1372_p7 = pnand %p1371_p6, %p1497_p4 }
 0x15c   : > { %p1377_p12 = por %p1376_p11, %p1375_p10 }
 0x15d   : > { %p1373_p9 = pneg %p1372_p7 }
 0x15f   : > { %p1378_p13 = pnand %p1377_p12, %p1373_p9 }
 0x161   : > { %1381 = shalt.err (!%p1378_p13)
}
 0x162   : > { %s1435_s10 = smov 128   ;;  %s1436_s28 = smov 8  }
 0x163   : > { %1259 = dma.vmem_to_hbm [thread:$0]  (%p1497_p4), %s1719_s11, 8192, %s1717_s21, %s1727_s15, %s1435_s10, %s1435_s10, %s1436_s28  }
 0x164 PF: > { %p1265_p0 = scmp.ge.s32.totalorder %s1432_s17, 2  ;;  %s991_s7 = sand.u32 1, %s1412_s12  }
 0x165   : > { %s992_s18 = scalar_lea.sflag [#allocation3], %s991_s7 }
 0x166   : > { %p1262_p1 = pnand %p1265_p0, %p1504_p8 }
 0x168   : > { %p1263_p2 = pneg %p1262_p1 }
 0x16a   : > { %1407 = dma.done.wait (%p1263_p2), %s992_s18, 8192  }
 0x16b   : > { %1409 = vsyncadd (%p1263_p2), %s992_s18, 4294959104  ;;  %s16_s17 = sadd.s32 1, %s1432_s17   ;;  %s1778_s12 = smov %s1416_s13 }
 0x16c   : > { %p13_p3 = scmp.ge.s32.totalorder %s16_s17, 4   ;;  %s1779_s13 = smov %s1420_s14 }
 0x16d   : > { %s1780_s14 = smov %s1510_s25  ;;  %s1781_s15 = smov %s1428_s16 }
 0x16e   : > { %s1782_s16 = smov %s1784_s20  ;;  %15 = sbr.rel (!%p13_p3) target bundleno = 4 (0x4), region = 70 }
 0x173   :  { %997 = vsyncpa [#allocation3], 1 }
 0x174   :  { %999 = vsyncpa [#allocation3 + $0x1], 1 }

</bundles_post_ra>
